<compile_context>
chip_gen: v7x
topology: tpu7x:2x2x1
jax: 0.10.0
libtpu: 0.0.40
codegen_flags: <defaults>
</compile_context>

<pallas_src>
import math
from functools import partial

import jax
import jax.numpy as jnp
from jax import lax
from jax.experimental import pallas as pl
from jax.experimental.pallas import tpu as pltpu  # noqa: F401  (TPU backend assumed)

# ---------------- config (small, consistent with the module) ----------------
BATCH = 2
SEQ = 8
HIDDEN = 32
NUM_HEADS = 4
HEAD_DIM = HIDDEN // NUM_HEADS
MLP_DIM = 64
EPS = 1e-6
_INV_SQRT2 = 1.0 / math.sqrt(2.0)
_NEG_BIG = -1e30          # finite "masked" score (exp underflows to exactly 0)

# ---- single packed weight slab layout: (_SLAB_ROWS, 128) f32 ----
_LANES = 128
_ROW_WQKV = 0                     # 32 rows, lanes [0:96) = wq | wk | wv
_ROW_WO = _ROW_WQKV + HIDDEN      # 32 rows, lanes [0:32)
_ROW_W1 = _ROW_WO + HIDDEN        # 32 rows, lanes [0:64)
_ROW_W2 = _ROW_W1 + HIDDEN        # 64 rows, lanes [0:32)
_ROW_VEC = _ROW_W2 + MLP_DIM      # 8 packed vector rows
(_V_LN1G, _V_LN1B, _V_LN2G, _V_LN2B,
 _V_BQKV, _V_BO, _V_B1, _V_B2) = range(8)
_N_VEC = 8
_SLAB_ROWS = _ROW_VEC + _N_VEC    # 168


# ------------------------------ kernel helpers --------------------------------
def _layernorm(v, g, b):
    # PyTorch LayerNorm: biased variance, eps added to variance.
    mu = jnp.mean(v, axis=-1, keepdims=True)
    var = jnp.mean((v - mu) * (v - mu), axis=-1, keepdims=True)
    return (v - mu) * lax.rsqrt(var + EPS) * g + b


def _erf(v):
    # Abramowitz & Stegun 7.1.26 (|err| <= 1.5e-7): exact-GELU fidelity within
    # fp32 noise, built only from Mosaic-supported elementwise ops
    # (abs / div / exp / where) so we never rely on a lax.erf lowering.
    a1, a2, a3, a4, a5 = (0.254829592, -0.284496736, 1.421413741,
                          -1.453152027, 1.061405429)
    p = 0.3275911
    av = jnp.abs(v)
    t = 1.0 / (1.0 + p * av)
    poly = ((((a5 * t + a4) * t + a3) * t + a2) * t + a1) * t
    e = 1.0 - poly * jnp.exp(-(av * av))
    return jnp.where(v < 0.0, -e, e)


def _gelu_exact(v):
    # torch.nn.functional.gelu default ('none') = exact erf formulation.
    return 0.5 * v * (1.0 + _erf(v * _INV_SQRT2))


# ------------------------------ Pallas kernel --------------------------------
def encoder_layer_kernel(x_ref, w_ref, y_ref, probs_ref=None):
    x = x_ref[...]                                    # (BS, H) f32
    bs = x.shape[0]

    vecs = w_ref[_ROW_VEC:_ROW_VEC + _N_VEC, :]       # (8, 128)

    def vrow(i, width=HIDDEN):
        return vecs[i:i + 1, :width]                  # (1, width), lane-0 aligned

    ln1_g, ln1_b = vrow(_V_LN1G), vrow(_V_LN1B)
    ln2_g, ln2_b = vrow(_V_LN2G), vrow(_V_LN2B)
    bqkv = vecs[_V_BQKV:_V_BQKV + 1, :]               # (1, 128); lanes >= 96 are 0
    bo, b2 = vrow(_V_BO), vrow(_V_B2)
    b1 = vrow(_V_B1, MLP_DIM)

    # ---- attention block: h = x; x = LN(x); x = Attn(x, x); x = x + h ----
    xn = _layernorm(x, ln1_g, ln1_b)                  # (BS, H)

    # Fused QKV projection: one MXU push, 128-lane-dense RHS.
    qkv = jnp.dot(xn, w_ref[_ROW_WQKV:_ROW_WQKV + HIDDEN, :],
                  preferred_element_type=jnp.float32) + bqkv       # (BS, 128)
    q = qkv[:, 0 * HIDDEN:1 * HIDDEN]
    k = qkv[:, 1 * HIDDEN:2 * HIDDEN]
    v = qkv[:, 2 * HIDDEN:3 * HIDDEN]

    inv_scale = 1.0 / math.sqrt(HEAD_DIM)
    lane = lax.broadcasted_iota(jnp.int32, (1, HIDDEN), 1)
    # Per-head lane masks (trace-time constants, hoisted).
    head_masks = [
        ((lane >= h * HEAD_DIM) & (lane < (h + 1) * HEAD_DIM)).astype(jnp.float32)
        for h in range(NUM_HEADS)
    ]

    # Block-diagonal additive bias so both batches share one score matrix.
    ridx = lax.broadcasted_iota(jnp.int32, (bs, bs), 0)
    cidx = lax.broadcasted_iota(jnp.int32, (bs, bs), 1)
    same_batch = jnp.zeros((bs, bs), jnp.bool_)
    for b in range(BATCH):                            # static loop, B = 2
        rin = (ridx >= b * SEQ) & (ridx < (b + 1) * SEQ)
        cin = (cidx >= b * SEQ) & (cidx < (b + 1) * SEQ)
        same_batch = same_batch | (rin & cin)
    batch_bias = jnp.where(same_batch, 0.0, _NEG_BIG).astype(jnp.float32)

    # Contract last dims of both operands: A @ B.T without an explicit transpose.
    dn = (((1,), (1,)), ((), ()))

    ctx = jnp.zeros((bs, HIDDEN), jnp.float32)
    probs_heads = []
    for h in range(NUM_HEADS):                        # static loop, 4 heads
        m = head_masks[h]
        # (q * mask_h) @ k.T == q_h @ k_h.T (non-head lanes contribute 0).
        s = lax.dot_general(q * m, k, dn,
                            preferred_element_type=jnp.float32) * inv_scale
        s = s + batch_bias                            # kill cross-batch entries
        s = s - jnp.max(s, axis=-1, keepdims=True)
        e = jnp.exp(s)
        p = e / jnp.sum(e, axis=-1, keepdims=True)    # softmax(dim=-1)
        if probs_ref is not None:
            probs_heads.append(p)
        # p @ (v * mask_h) lands head h in lanes [h*8, h*8+8); summing over
        # heads rebuilds the concatenated context with no lane slicing/concat.
        ctx = ctx + jnp.dot(p, v * m, preferred_element_type=jnp.float32)

    if probs_ref is not None:
        # One consolidated store; wrapper extracts the per-batch diag blocks.
        probs_ref[...] = jnp.stack(probs_heads, axis=0).astype(probs_ref.dtype)

    attn_out = jnp.dot(ctx, w_ref[_ROW_WO:_ROW_WO + HIDDEN, :HIDDEN],
                       preferred_element_type=jnp.float32) + bo
    # attn_dropout / proj_dropout: identity at inference.
    x1 = attn_out + x                                 # residual

    # ---- MLP block: h = x; x = LN(x); x = MLP(x); x = x + h ----
    xn2 = _layernorm(x1, ln2_g, ln2_b)
    h1 = jnp.dot(xn2, w_ref[_ROW_W1:_ROW_W1 + HIDDEN, :MLP_DIM],
                 preferred_element_type=jnp.float32) + b1
    h1 = _gelu_exact(h1)
    h2 = jnp.dot(h1, w_ref[_ROW_W2:_ROW_W2 + MLP_DIM, :HIDDEN],
                 preferred_element_type=jnp.float32) + b2
    y_ref[...] = (h2 + x1).astype(y_ref.dtype)        # residual


# ------------------------------ packing (once, at load time) ------------------
def pack_params(params):
    """Pack every weight/bias into one lane-padded (168, 128) f32 slab."""
    def rowpad(v):
        v = jnp.asarray(v, jnp.float32).reshape(-1)
        return jnp.pad(v, (0, _LANES - v.shape[0]))

    slab = jnp.zeros((_SLAB_ROWS, _LANES), jnp.float32)
    wqkv = jnp.concatenate([params["wq"], params["wk"], params["wv"]], axis=1)
    slab = slab.at[_ROW_WQKV:_ROW_WQKV + HIDDEN, :3 * HIDDEN].set(wqkv)
    slab = slab.at[_ROW_WO:_ROW_WO + HIDDEN, :HIDDEN].set(params["wo"])
    slab = slab.at[_ROW_W1:_ROW_W1 + HIDDEN, :MLP_DIM].set(params["w1"])
    slab = slab.at[_ROW_W2:_ROW_W2 + MLP_DIM, :HIDDEN].set(params["w2"])

    bqkv = jnp.concatenate([params["bq"].reshape(-1),
                            params["bk"].reshape(-1),
                            params["bv"].reshape(-1)])
    vec = jnp.stack([
        rowpad(params["ln1_g"]), rowpad(params["ln1_b"]),
        rowpad(params["ln2_g"]), rowpad(params["ln2_b"]),
        rowpad(bqkv), rowpad(params["bo"]),
        rowpad(params["b1"]), rowpad(params["b2"]),
    ], axis=0)                                        # (8, 128)
    slab = slab.at[_ROW_VEC:_ROW_VEC + _N_VEC, :].set(vec)
    return slab


# ------------------------------ wrapper (hot path) -----------------------------
@partial(jax.jit, static_argnames=("vis",))
def transformer_encoder_layer(x, wslab, vis=True):
    B, S, H = x.shape
    assert (B, S, H) == (BATCH, SEQ, HIDDEN)
    x2d = x.reshape(B * S, H)                         # token-wise ops -> free

    y_shape = jax.ShapeDtypeStruct((B * S, H), x.dtype)
    if vis:
        out_shape = (y_shape,
                     jax.ShapeDtypeStruct((NUM_HEADS, B * S, B * S), jnp.float32))
    else:
        out_shape = y_shape

    # No grid: single invocation, whole arrays resident in VMEM, no pipeline /
    # double-buffering bookkeeping, exactly two input DMAs (x + weight slab).
    outs = pl.pallas_call(encoder_layer_kernel, out_shape=out_shape)(x2d, wslab)

    if vis:
        y2d, probs_full = outs                        # probs_full: (NH, BS, BS)
        probs = jnp.stack(
            [probs_full[:, b * S:(b + 1) * S, b * S:(b + 1) * S]
             for b in range(B)], axis=0)              # (B, NH, S, S)
        return y2d.reshape(B, S, H), probs
    return outs.reshape(B, S, H)


# ------------------------------ reference (pure JAX) --------------------------
def reference(x, p):
    hi = lax.Precision.HIGHEST   # true fp32 matmuls, matching the kernel

    def ln(v, g, b):
        mu = v.mean(-1, keepdims=True)
        var = ((v - mu) ** 2).mean(-1, keepdims=True)
        return (v - mu) / jnp.sqrt(var + EPS) * g + b

    B, S, H = x.shape
    xn = ln(x, p["ln1_g"][0], p["ln1_b"][0])
    q = jnp.matmul(xn, p["wq"], precision=hi) + p["bq"][0]
    k = jnp.matmul(xn, p["wk"], precision=hi) + p["bk"][0]
    v = jnp.matmul(xn, p["wv"], precision=hi) + p["bv"][0]

    def heads(t):
        return t.reshape(B, S, NUM_HEADS, HEAD_DIM).transpose(0, 2, 1, 3)

    qh, kh, vh = heads(q), heads(k), heads(v)
    scores = jnp.einsum("bhqd,bhkd->bhqk", qh, kh,
                        precision=hi) / math.sqrt(HEAD_DIM)
    probs = jax.nn.softmax(scores, axis=-1)
    ctx = jnp.einsum("bhqk,bhkd->bhqd", probs, vh, precision=hi)
    ctx = ctx.transpose(0, 2, 1, 3).reshape(B, S, H)
    attn_out = jnp.matmul(ctx, p["wo"], precision=hi) + p["bo"][0]
    x1 = attn_out + x

    xn2 = ln(x1, p["ln2_g"][0], p["ln2_b"][0])
    h1 = jnp.matmul(xn2, p["w1"], precision=hi) + p["b1"][0]
    h1 = 0.5 * h1 * (1.0 + lax.erf(h1 * _INV_SQRT2))
    h2 = jnp.matmul(h1, p["w2"], precision=hi) + p["b2"][0]
    return h2 + x1, probs


# ------------------------------ params -----------------------------------------
def make_params(key):
    ks = jax.random.split(key, 8)

    def lin(k, din, dout, scale=0.05):
        return jax.random.normal(k, (din, dout), jnp.float32) * scale

    return {
        "ln1_g": jnp.ones((1, HIDDEN), jnp.float32),
        "ln1_b": jnp.zeros((1, HIDDEN), jnp.float32),
        "ln2_g": jnp.ones((1, HIDDEN), jnp.float32),
        "ln2_b": jnp.zeros((1, HIDDEN), jnp.float32),
        "wq": lin(ks[0], HIDDEN, HIDDEN),
        "wk": lin(ks[1], HIDDEN, HIDDEN),
        "wv": lin(ks[2], HIDDEN, HIDDEN),
        "wo": lin(ks[3], HIDDEN, HIDDEN),
        "bq": jax.random.normal(ks[4], (1, HIDDEN), jnp.float32) * 0.01,
        "bk": jnp.zeros((1, HIDDEN), jnp.float32),
        "bv": jnp.zeros((1, HIDDEN), jnp.float32),
        "bo": jnp.zeros((1, HIDDEN), jnp.float32),
        "w1": lin(ks[5], HIDDEN, MLP_DIM),
        "b1": jax.random.normal(ks[6], (1, MLP_DIM), jnp.float32) * 1e-6,
        "w2": lin(ks[7], MLP_DIM, HIDDEN),
        "b2": jnp.zeros((1, HIDDEN), jnp.float32),
    }


# ------------------------------ main -------------------------------------------
if __name__ == "__main__":
    key = jax.random.PRNGKey(0)
    kx, kp = jax.random.split(key)
    x = jax.random.normal(kx, (BATCH, SEQ, HIDDEN), jnp.float32)
    params = make_params(kp)

    # One-time packing at parameter-load time (NOT in the per-call hot path).
    wslab = jax.block_until_ready(pack_params(params))

    # vis=True path (returns attention probabilities, like the PyTorch module).
    y, attn_probs = transformer_encoder_layer(x, wslab, vis=True)
    y = jax.block_until_ready(y)
    attn_probs = jax.block_until_ready(attn_probs)

    y_ref, probs_expected = reference(x, params)
    # Tolerances cover a possible f32-matmul precision-mode difference between
    # the Mosaic MXU path and the XLA reference; real bugs are O(0.1) and caught.
    assert jnp.allclose(y, y_ref, atol=2e-3, rtol=2e-3), "output mismatch"
    assert jnp.allclose(attn_probs, probs_expected, atol=1e-3, rtol=1e-3), \
        "probs mismatch"

    # vis=False path: skips the probs output / writeback entirely.
    y_novis = jax.block_until_ready(
        transformer_encoder_layer(x, wslab, vis=False))
    assert jnp.allclose(y_novis, y_ref, atol=2e-3, rtol=2e-3), "vis=False mismatch"

    print("KERNEL_OK")
</pallas_src>

<mosaic_0001>
module attributes {stable_mosaic.version = 11 : i64} {
  func.func @encoder_layer_kernel(%arg0: memref<16x32xf32, #tpu.memory_space<vmem>>, %arg1: memref<168x128xf32, #tpu.memory_space<vmem>>, %arg2: memref<16x32xf32, #tpu.memory_space<vmem>>, %arg3: memref<4x16x16xf32, #tpu.memory_space<vmem>>) attributes {dimension_semantics = [], scalar_prefetch = 0 : i64, scratch_operands = 0 : i64, tpu.core_type = #tpu.core_type<tc>} {
    %c0 = arith.constant 0 : index
    %c0_0 = arith.constant 0 : index
    %0 = vector.load %arg0[%c0, %c0_0] : memref<16x32xf32, #tpu.memory_space<vmem>>, vector<16x32xf32>
    %c160 = arith.constant 160 : index
    %c0_1 = arith.constant 0 : index
    %1 = vector.load %arg1[%c160, %c0_1] : memref<168x128xf32, #tpu.memory_space<vmem>>, vector<8x128xf32>
    %2 = vector.extract_strided_slice %1 {offsets = [0, 0], sizes = [1, 32], strides = [1, 1]} : vector<8x128xf32> to vector<1x32xf32>
    %3 = vector.extract_strided_slice %1 {offsets = [1, 0], sizes = [1, 32], strides = [1, 1]} : vector<8x128xf32> to vector<1x32xf32>
    %4 = vector.extract_strided_slice %1 {offsets = [2, 0], sizes = [1, 32], strides = [1, 1]} : vector<8x128xf32> to vector<1x32xf32>
    %5 = vector.extract_strided_slice %1 {offsets = [3, 0], sizes = [1, 32], strides = [1, 1]} : vector<8x128xf32> to vector<1x32xf32>
    %6 = vector.extract_strided_slice %1 {offsets = [4, 0], sizes = [1, 128], strides = [1, 1]} : vector<8x128xf32> to vector<1x128xf32>
    %7 = vector.extract_strided_slice %1 {offsets = [5, 0], sizes = [1, 32], strides = [1, 1]} : vector<8x128xf32> to vector<1x32xf32>
    %8 = vector.extract_strided_slice %1 {offsets = [7, 0], sizes = [1, 32], strides = [1, 1]} : vector<8x128xf32> to vector<1x32xf32>
    %9 = vector.extract_strided_slice %1 {offsets = [6, 0], sizes = [1, 64], strides = [1, 1]} : vector<8x128xf32> to vector<1x64xf32>
    %cst = arith.constant dense<0.000000e+00> : vector<16xf32>
    %10 = vector.multi_reduction <add>, %0, %cst [1] : vector<16x32xf32> to vector<16xf32>
    %11 = vector.shape_cast %10 : vector<16xf32> to vector<16x1xf32>
    %cst_2 = arith.constant 3.200000e+01 : f32
    %12 = vector.broadcast %cst_2 : f32 to vector<16x1xf32>
    %13 = arith.divf %11, %12 : vector<16x1xf32>
    %14 = vector.broadcast %13 : vector<16x1xf32> to vector<16x32xf32>
    %15 = arith.subf %0, %14 : vector<16x32xf32>
    %16 = vector.broadcast %13 : vector<16x1xf32> to vector<16x32xf32>
    %17 = arith.subf %0, %16 : vector<16x32xf32>
    %18 = arith.mulf %15, %17 : vector<16x32xf32>
    %cst_3 = arith.constant dense<0.000000e+00> : vector<16xf32>
    %19 = vector.multi_reduction <add>, %18, %cst_3 [1] : vector<16x32xf32> to vector<16xf32>
    %20 = vector.shape_cast %19 : vector<16xf32> to vector<16x1xf32>
    %cst_4 = arith.constant 3.200000e+01 : f32
    %21 = vector.broadcast %cst_4 : f32 to vector<16x1xf32>
    %22 = arith.divf %20, %21 : vector<16x1xf32>
    %23 = vector.broadcast %13 : vector<16x1xf32> to vector<16x32xf32>
    %24 = arith.subf %0, %23 : vector<16x32xf32>
    %cst_5 = arith.constant 9.99999997E-7 : f32
    %25 = vector.broadcast %cst_5 : f32 to vector<16x1xf32>
    %26 = arith.addf %22, %25 : vector<16x1xf32>
    %27 = math.rsqrt %26 : vector<16x1xf32>
    %28 = vector.broadcast %27 : vector<16x1xf32> to vector<16x32xf32>
    %29 = arith.mulf %24, %28 : vector<16x32xf32>
    %30 = vector.broadcast %2 : vector<1x32xf32> to vector<16x32xf32>
    %31 = arith.mulf %29, %30 : vector<16x32xf32>
    %32 = vector.broadcast %3 : vector<1x32xf32> to vector<16x32xf32>
    %33 = arith.addf %31, %32 : vector<16x32xf32>
    %c0_6 = arith.constant 0 : index
    %c0_7 = arith.constant 0 : index
    %34 = vector.load %arg1[%c0_6, %c0_7] : memref<168x128xf32, #tpu.memory_space<vmem>>, vector<32x128xf32>
    %cst_8 = arith.constant dense<0.000000e+00> : vector<16x128xf32>
    %35 = tpu.matmul %33, %34, %cst_8 {dimension_numbers = #tpu.dot_dimension_numbers<[1], [0], [0], [1], [0, 0, 1, 1], [], []>} : vector<16x32xf32>, vector<32x128xf32>, vector<16x128xf32> -> vector<16x128xf32>
    %36 = vector.broadcast %6 : vector<1x128xf32> to vector<16x128xf32>
    %37 = arith.addf %35, %36 : vector<16x128xf32>
    %38 = vector.extract_strided_slice %37 {offsets = [0, 0], sizes = [16, 32], strides = [1, 1]} : vector<16x128xf32> to vector<16x32xf32>
    %39 = vector.extract_strided_slice %37 {offsets = [0, 32], sizes = [16, 32], strides = [1, 1]} : vector<16x128xf32> to vector<16x32xf32>
    %40 = vector.extract_strided_slice %37 {offsets = [0, 64], sizes = [16, 32], strides = [1, 1]} : vector<16x128xf32> to vector<16x32xf32>
    %41 = tpu.iota {dimensions = array<i32: 1>} : vector<1x32xi32>
    %c0_i32 = arith.constant 0 : i32
    %42 = vector.broadcast %c0_i32 : i32 to vector<1x32xi32>
    %43 = arith.cmpi sge, %41, %42 : vector<1x32xi32>
    %c8_i32 = arith.constant 8 : i32
    %44 = vector.broadcast %c8_i32 : i32 to vector<1x32xi32>
    %45 = arith.cmpi slt, %41, %44 : vector<1x32xi32>
    %46 = arith.andi %43, %45 : vector<1x32xi1>
    %47 = arith.extui %46 : vector<1x32xi1> to vector<1x32xi32>
    %48 = arith.sitofp %47 : vector<1x32xi32> to vector<1x32xf32>
    %c8_i32_9 = arith.constant 8 : i32
    %49 = vector.broadcast %c8_i32_9 : i32 to vector<1x32xi32>
    %50 = arith.cmpi sge, %41, %49 : vector<1x32xi32>
    %c16_i32 = arith.constant 16 : i32
    %51 = vector.broadcast %c16_i32 : i32 to vector<1x32xi32>
    %52 = arith.cmpi slt, %41, %51 : vector<1x32xi32>
    %53 = arith.andi %50, %52 : vector<1x32xi1>
    %54 = arith.extui %53 : vector<1x32xi1> to vector<1x32xi32>
    %55 = arith.sitofp %54 : vector<1x32xi32> to vector<1x32xf32>
    %c16_i32_10 = arith.constant 16 : i32
    %56 = vector.broadcast %c16_i32_10 : i32 to vector<1x32xi32>
    %57 = arith.cmpi sge, %41, %56 : vector<1x32xi32>
    %c24_i32 = arith.constant 24 : i32
    %58 = vector.broadcast %c24_i32 : i32 to vector<1x32xi32>
    %59 = arith.cmpi slt, %41, %58 : vector<1x32xi32>
    %60 = arith.andi %57, %59 : vector<1x32xi1>
    %61 = arith.extui %60 : vector<1x32xi1> to vector<1x32xi32>
    %62 = arith.sitofp %61 : vector<1x32xi32> to vector<1x32xf32>
    %c24_i32_11 = arith.constant 24 : i32
    %63 = vector.broadcast %c24_i32_11 : i32 to vector<1x32xi32>
    %64 = arith.cmpi sge, %41, %63 : vector<1x32xi32>
    %c32_i32 = arith.constant 32 : i32
    %65 = vector.broadcast %c32_i32 : i32 to vector<1x32xi32>
    %66 = arith.cmpi slt, %41, %65 : vector<1x32xi32>
    %67 = arith.andi %64, %66 : vector<1x32xi1>
    %68 = arith.extui %67 : vector<1x32xi1> to vector<1x32xi32>
    %69 = arith.sitofp %68 : vector<1x32xi32> to vector<1x32xf32>
    %70 = tpu.iota {dimensions = array<i32: 0>} : vector<16x16xi32>
    %71 = tpu.iota {dimensions = array<i32: 1>} : vector<16x16xi32>
    %false = arith.constant false
    %72 = vector.broadcast %false : i1 to vector<16x16xi1>
    %c0_i32_12 = arith.constant 0 : i32
    %73 = vector.broadcast %c0_i32_12 : i32 to vector<16x16xi32>
    %74 = arith.cmpi sge, %70, %73 : vector<16x16xi32>
    %c8_i32_13 = arith.constant 8 : i32
    %75 = vector.broadcast %c8_i32_13 : i32 to vector<16x16xi32>
    %76 = arith.cmpi slt, %70, %75 : vector<16x16xi32>
    %77 = arith.andi %74, %76 : vector<16x16xi1>
    %c0_i32_14 = arith.constant 0 : i32
    %78 = vector.broadcast %c0_i32_14 : i32 to vector<16x16xi32>
    %79 = arith.cmpi sge, %71, %78 : vector<16x16xi32>
    %c8_i32_15 = arith.constant 8 : i32
    %80 = vector.broadcast %c8_i32_15 : i32 to vector<16x16xi32>
    %81 = arith.cmpi slt, %71, %80 : vector<16x16xi32>
    %82 = arith.andi %79, %81 : vector<16x16xi1>
    %83 = arith.andi %77, %82 : vector<16x16xi1>
    %84 = arith.ori %72, %83 : vector<16x16xi1>
    %c8_i32_16 = arith.constant 8 : i32
    %85 = vector.broadcast %c8_i32_16 : i32 to vector<16x16xi32>
    %86 = arith.cmpi sge, %70, %85 : vector<16x16xi32>
    %c16_i32_17 = arith.constant 16 : i32
    %87 = vector.broadcast %c16_i32_17 : i32 to vector<16x16xi32>
    %88 = arith.cmpi slt, %70, %87 : vector<16x16xi32>
    %89 = arith.andi %86, %88 : vector<16x16xi1>
    %c8_i32_18 = arith.constant 8 : i32
    %90 = vector.broadcast %c8_i32_18 : i32 to vector<16x16xi32>
    %91 = arith.cmpi sge, %71, %90 : vector<16x16xi32>
    %c16_i32_19 = arith.constant 16 : i32
    %92 = vector.broadcast %c16_i32_19 : i32 to vector<16x16xi32>
    %93 = arith.cmpi slt, %71, %92 : vector<16x16xi32>
    %94 = arith.andi %91, %93 : vector<16x16xi1>
    %95 = arith.andi %89, %94 : vector<16x16xi1>
    %96 = arith.ori %84, %95 : vector<16x16xi1>
    %cst_20 = arith.constant 0.000000e+00 : f32
    %cst_21 = arith.constant -1.000000e+30 : f32
    %97 = vector.broadcast %cst_20 : f32 to vector<16x16xf32>
    %98 = vector.broadcast %cst_21 : f32 to vector<16x16xf32>
    %99 = arith.select %96, %97, %98 : vector<16x16xi1>, vector<16x16xf32>
    %cst_22 = arith.constant 0.000000e+00 : f32
    %100 = vector.broadcast %cst_22 : f32 to vector<16x32xf32>
    %101 = vector.broadcast %48 : vector<1x32xf32> to vector<16x32xf32>
    %102 = arith.mulf %38, %101 : vector<16x32xf32>
    %cst_23 = arith.constant dense<0.000000e+00> : vector<16x16xf32>
    %103 = tpu.matmul %102, %39, %cst_23 {dimension_numbers = #tpu.dot_dimension_numbers<[1], [1], [0], [0], [0, 0, 1, 0], [], []>} : vector<16x32xf32>, vector<16x32xf32>, vector<16x16xf32> -> vector<16x16xf32>
    %cst_24 = arith.constant 0.353553385 : f32
    %104 = vector.broadcast %cst_24 : f32 to vector<16x16xf32>
    %105 = arith.mulf %103, %104 : vector<16x16xf32>
    %106 = arith.addf %105, %99 : vector<16x16xf32>
    %cst_25 = arith.constant dense<0xFF800000> : vector<16xf32>
    %107 = vector.multi_reduction <maximumf>, %106, %cst_25 [1] : vector<16x16xf32> to vector<16xf32>
    %108 = vector.shape_cast %107 : vector<16xf32> to vector<16x1xf32>
    %109 = vector.broadcast %108 : vector<16x1xf32> to vector<16x16xf32>
    %110 = arith.subf %106, %109 : vector<16x16xf32>
    %111 = math.exp %110 : vector<16x16xf32>
    %cst_26 = arith.constant dense<0.000000e+00> : vector<16xf32>
    %112 = vector.multi_reduction <add>, %111, %cst_26 [1] : vector<16x16xf32> to vector<16xf32>
    %113 = vector.shape_cast %112 : vector<16xf32> to vector<16x1xf32>
    %114 = vector.broadcast %113 : vector<16x1xf32> to vector<16x16xf32>
    %115 = arith.divf %111, %114 : vector<16x16xf32>
    %116 = vector.broadcast %48 : vector<1x32xf32> to vector<16x32xf32>
    %117 = arith.mulf %40, %116 : vector<16x32xf32>
    %cst_27 = arith.constant dense<0.000000e+00> : vector<16x32xf32>
    %118 = tpu.matmul %115, %117, %cst_27 {dimension_numbers = #tpu.dot_dimension_numbers<[1], [0], [0], [1], [0, 0, 1, 1], [], []>} : vector<16x16xf32>, vector<16x32xf32>, vector<16x32xf32> -> vector<16x32xf32>
    %119 = arith.addf %100, %118 : vector<16x32xf32>
    %120 = vector.broadcast %55 : vector<1x32xf32> to vector<16x32xf32>
    %121 = arith.mulf %38, %120 : vector<16x32xf32>
    %cst_28 = arith.constant dense<0.000000e+00> : vector<16x16xf32>
    %122 = tpu.matmul %121, %39, %cst_28 {dimension_numbers = #tpu.dot_dimension_numbers<[1], [1], [0], [0], [0, 0, 1, 0], [], []>} : vector<16x32xf32>, vector<16x32xf32>, vector<16x16xf32> -> vector<16x16xf32>
    %cst_29 = arith.constant 0.353553385 : f32
    %123 = vector.broadcast %cst_29 : f32 to vector<16x16xf32>
    %124 = arith.mulf %122, %123 : vector<16x16xf32>
    %125 = arith.addf %124, %99 : vector<16x16xf32>
    %cst_30 = arith.constant dense<0xFF800000> : vector<16xf32>
    %126 = vector.multi_reduction <maximumf>, %125, %cst_30 [1] : vector<16x16xf32> to vector<16xf32>
    %127 = vector.shape_cast %126 : vector<16xf32> to vector<16x1xf32>
    %128 = vector.broadcast %127 : vector<16x1xf32> to vector<16x16xf32>
    %129 = arith.subf %125, %128 : vector<16x16xf32>
    %130 = math.exp %129 : vector<16x16xf32>
    %cst_31 = arith.constant dense<0.000000e+00> : vector<16xf32>
    %131 = vector.multi_reduction <add>, %130, %cst_31 [1] : vector<16x16xf32> to vector<16xf32>
    %132 = vector.shape_cast %131 : vector<16xf32> to vector<16x1xf32>
    %133 = vector.broadcast %132 : vector<16x1xf32> to vector<16x16xf32>
    %134 = arith.divf %130, %133 : vector<16x16xf32>
    %135 = vector.broadcast %55 : vector<1x32xf32> to vector<16x32xf32>
    %136 = arith.mulf %40, %135 : vector<16x32xf32>
    %cst_32 = arith.constant dense<0.000000e+00> : vector<16x32xf32>
    %137 = tpu.matmul %134, %136, %cst_32 {dimension_numbers = #tpu.dot_dimension_numbers<[1], [0], [0], [1], [0, 0, 1, 1], [], []>} : vector<16x16xf32>, vector<16x32xf32>, vector<16x32xf32> -> vector<16x32xf32>
    %138 = arith.addf %119, %137 : vector<16x32xf32>
    %139 = vector.broadcast %62 : vector<1x32xf32> to vector<16x32xf32>
    %140 = arith.mulf %38, %139 : vector<16x32xf32>
    %cst_33 = arith.constant dense<0.000000e+00> : vector<16x16xf32>
    %141 = tpu.matmul %140, %39, %cst_33 {dimension_numbers = #tpu.dot_dimension_numbers<[1], [1], [0], [0], [0, 0, 1, 0], [], []>} : vector<16x32xf32>, vector<16x32xf32>, vector<16x16xf32> -> vector<16x16xf32>
    %cst_34 = arith.constant 0.353553385 : f32
    %142 = vector.broadcast %cst_34 : f32 to vector<16x16xf32>
    %143 = arith.mulf %141, %142 : vector<16x16xf32>
    %144 = arith.addf %143, %99 : vector<16x16xf32>
    %cst_35 = arith.constant dense<0xFF800000> : vector<16xf32>
    %145 = vector.multi_reduction <maximumf>, %144, %cst_35 [1] : vector<16x16xf32> to vector<16xf32>
    %146 = vector.shape_cast %145 : vector<16xf32> to vector<16x1xf32>
    %147 = vector.broadcast %146 : vector<16x1xf32> to vector<16x16xf32>
    %148 = arith.subf %144, %147 : vector<16x16xf32>
    %149 = math.exp %148 : vector<16x16xf32>
    %cst_36 = arith.constant dense<0.000000e+00> : vector<16xf32>
    %150 = vector.multi_reduction <add>, %149, %cst_36 [1] : vector<16x16xf32> to vector<16xf32>
    %151 = vector.shape_cast %150 : vector<16xf32> to vector<16x1xf32>
    %152 = vector.broadcast %151 : vector<16x1xf32> to vector<16x16xf32>
    %153 = arith.divf %149, %152 : vector<16x16xf32>
    %154 = vector.broadcast %62 : vector<1x32xf32> to vector<16x32xf32>
    %155 = arith.mulf %40, %154 : vector<16x32xf32>
    %cst_37 = arith.constant dense<0.000000e+00> : vector<16x32xf32>
    %156 = tpu.matmul %153, %155, %cst_37 {dimension_numbers = #tpu.dot_dimension_numbers<[1], [0], [0], [1], [0, 0, 1, 1], [], []>} : vector<16x16xf32>, vector<16x32xf32>, vector<16x32xf32> -> vector<16x32xf32>
    %157 = arith.addf %138, %156 : vector<16x32xf32>
    %158 = vector.broadcast %69 : vector<1x32xf32> to vector<16x32xf32>
    %159 = arith.mulf %38, %158 : vector<16x32xf32>
    %cst_38 = arith.constant dense<0.000000e+00> : vector<16x16xf32>
    %160 = tpu.matmul %159, %39, %cst_38 {dimension_numbers = #tpu.dot_dimension_numbers<[1], [1], [0], [0], [0, 0, 1, 0], [], []>} : vector<16x32xf32>, vector<16x32xf32>, vector<16x16xf32> -> vector<16x16xf32>
    %cst_39 = arith.constant 0.353553385 : f32
    %161 = vector.broadcast %cst_39 : f32 to vector<16x16xf32>
    %162 = arith.mulf %160, %161 : vector<16x16xf32>
    %163 = arith.addf %162, %99 : vector<16x16xf32>
    %cst_40 = arith.constant dense<0xFF800000> : vector<16xf32>
    %164 = vector.multi_reduction <maximumf>, %163, %cst_40 [1] : vector<16x16xf32> to vector<16xf32>
    %165 = vector.shape_cast %164 : vector<16xf32> to vector<16x1xf32>
    %166 = vector.broadcast %165 : vector<16x1xf32> to vector<16x16xf32>
    %167 = arith.subf %163, %166 : vector<16x16xf32>
    %168 = math.exp %167 : vector<16x16xf32>
    %cst_41 = arith.constant dense<0.000000e+00> : vector<16xf32>
    %169 = vector.multi_reduction <add>, %168, %cst_41 [1] : vector<16x16xf32> to vector<16xf32>
    %170 = vector.shape_cast %169 : vector<16xf32> to vector<16x1xf32>
    %171 = vector.broadcast %170 : vector<16x1xf32> to vector<16x16xf32>
    %172 = arith.divf %168, %171 : vector<16x16xf32>
    %173 = vector.broadcast %69 : vector<1x32xf32> to vector<16x32xf32>
    %174 = arith.mulf %40, %173 : vector<16x32xf32>
    %cst_42 = arith.constant dense<0.000000e+00> : vector<16x32xf32>
    %175 = tpu.matmul %172, %174, %cst_42 {dimension_numbers = #tpu.dot_dimension_numbers<[1], [0], [0], [1], [0, 0, 1, 1], [], []>} : vector<16x16xf32>, vector<16x32xf32>, vector<16x32xf32> -> vector<16x32xf32>
    %176 = arith.addf %157, %175 : vector<16x32xf32>
    %177 = vector.shape_cast %115 : vector<16x16xf32> to vector<1x16x16xf32>
    %178 = vector.shape_cast %134 : vector<16x16xf32> to vector<1x16x16xf32>
    %179 = vector.shape_cast %153 : vector<16x16xf32> to vector<1x16x16xf32>
    %180 = vector.shape_cast %172 : vector<16x16xf32> to vector<1x16x16xf32>
    %181 = tpu.concatenate %177, %178, %179, %180 in 0 : vector<1x16x16xf32>, vector<1x16x16xf32>, vector<1x16x16xf32>, vector<1x16x16xf32> -> vector<4x16x16xf32>
    %c0_43 = arith.constant 0 : index
    %c0_44 = arith.constant 0 : index
    %c0_45 = arith.constant 0 : index
    %182 = vector.load %arg3[%c0_43, %c0_44, %c0_45] : memref<4x16x16xf32, #tpu.memory_space<vmem>>, vector<4x16x16xf32>
    tpu.vector_store %arg3[%c0_43, %c0_44, %c0_45], %181 {strides = array<i32>} : memref<4x16x16xf32, #tpu.memory_space<vmem>>, vector<4x16x16xf32>,
    %c32 = arith.constant 32 : index
    %c0_46 = arith.constant 0 : index
    %183 = vector.load %arg1[%c32, %c0_46] : memref<168x128xf32, #tpu.memory_space<vmem>>, vector<32x32xf32>
    %cst_47 = arith.constant dense<0.000000e+00> : vector<16x32xf32>
    %184 = tpu.matmul %176, %183, %cst_47 {dimension_numbers = #tpu.dot_dimension_numbers<[1], [0], [0], [1], [0, 0, 1, 1], [], []>} : vector<16x32xf32>, vector<32x32xf32>, vector<16x32xf32> -> vector<16x32xf32>
    %185 = vector.broadcast %7 : vector<1x32xf32> to vector<16x32xf32>
    %186 = arith.addf %184, %185 : vector<16x32xf32>
    %187 = arith.addf %186, %0 : vector<16x32xf32>
    %cst_48 = arith.constant dense<0.000000e+00> : vector<16xf32>
    %188 = vector.multi_reduction <add>, %187, %cst_48 [1] : vector<16x32xf32> to vector<16xf32>
    %189 = vector.shape_cast %188 : vector<16xf32> to vector<16x1xf32>
    %cst_49 = arith.constant 3.200000e+01 : f32
    %190 = vector.broadcast %cst_49 : f32 to vector<16x1xf32>
    %191 = arith.divf %189, %190 : vector<16x1xf32>
    %192 = vector.broadcast %191 : vector<16x1xf32> to vector<16x32xf32>
    %193 = arith.subf %187, %192 : vector<16x32xf32>
    %194 = vector.broadcast %191 : vector<16x1xf32> to vector<16x32xf32>
    %195 = arith.subf %187, %194 : vector<16x32xf32>
    %196 = arith.mulf %193, %195 : vector<16x32xf32>
    %cst_50 = arith.constant dense<0.000000e+00> : vector<16xf32>
    %197 = vector.multi_reduction <add>, %196, %cst_50 [1] : vector<16x32xf32> to vector<16xf32>
    %198 = vector.shape_cast %197 : vector<16xf32> to vector<16x1xf32>
    %cst_51 = arith.constant 3.200000e+01 : f32
    %199 = vector.broadcast %cst_51 : f32 to vector<16x1xf32>
    %200 = arith.divf %198, %199 : vector<16x1xf32>
    %201 = vector.broadcast %191 : vector<16x1xf32> to vector<16x32xf32>
    %202 = arith.subf %187, %201 : vector<16x32xf32>
    %cst_52 = arith.constant 9.99999997E-7 : f32
    %203 = vector.broadcast %cst_52 : f32 to vector<16x1xf32>
    %204 = arith.addf %200, %203 : vector<16x1xf32>
    %205 = math.rsqrt %204 : vector<16x1xf32>
    %206 = vector.broadcast %205 : vector<16x1xf32> to vector<16x32xf32>
    %207 = arith.mulf %202, %206 : vector<16x32xf32>
    %208 = vector.broadcast %4 : vector<1x32xf32> to vector<16x32xf32>
    %209 = arith.mulf %207, %208 : vector<16x32xf32>
    %210 = vector.broadcast %5 : vector<1x32xf32> to vector<16x32xf32>
    %211 = arith.addf %209, %210 : vector<16x32xf32>
    %c64 = arith.constant 64 : index
    %c0_53 = arith.constant 0 : index
    %212 = vector.load %arg1[%c64, %c0_53] : memref<168x128xf32, #tpu.memory_space<vmem>>, vector<32x64xf32>
    %cst_54 = arith.constant dense<0.000000e+00> : vector<16x64xf32>
    %213 = tpu.matmul %211, %212, %cst_54 {dimension_numbers = #tpu.dot_dimension_numbers<[1], [0], [0], [1], [0, 0, 1, 1], [], []>} : vector<16x32xf32>, vector<32x64xf32>, vector<16x64xf32> -> vector<16x64xf32>
    %214 = vector.broadcast %9 : vector<1x64xf32> to vector<16x64xf32>
    %215 = arith.addf %213, %214 : vector<16x64xf32>
    %cst_55 = arith.constant 5.000000e-01 : f32
    %216 = vector.broadcast %cst_55 : f32 to vector<16x64xf32>
    %217 = arith.mulf %216, %215 : vector<16x64xf32>
    %cst_56 = arith.constant 0.707106769 : f32
    %218 = vector.broadcast %cst_56 : f32 to vector<16x64xf32>
    %219 = arith.mulf %215, %218 : vector<16x64xf32>
    %220 = math.absf %219 : vector<16x64xf32>
    %cst_57 = arith.constant 0.327591091 : f32
    %221 = vector.broadcast %cst_57 : f32 to vector<16x64xf32>
    %222 = arith.mulf %221, %220 : vector<16x64xf32>
    %cst_58 = arith.constant 1.000000e+00 : f32
    %223 = vector.broadcast %cst_58 : f32 to vector<16x64xf32>
    %224 = arith.addf %223, %222 : vector<16x64xf32>
    %cst_59 = arith.constant 1.000000e+00 : f32
    %225 = vector.broadcast %cst_59 : f32 to vector<16x64xf32>
    %226 = arith.divf %225, %224 : vector<16x64xf32>
    %cst_60 = arith.constant 1.06140542 : f32
    %227 = vector.broadcast %cst_60 : f32 to vector<16x64xf32>
    %228 = arith.mulf %227, %226 : vector<16x64xf32>
    %cst_61 = arith.constant -1.45315206 : f32
    %229 = vector.broadcast %cst_61 : f32 to vector<16x64xf32>
    %230 = arith.addf %228, %229 : vector<16x64xf32>
    %231 = arith.mulf %230, %226 : vector<16x64xf32>
    %cst_62 = arith.constant 1.42141378 : f32
    %232 = vector.broadcast %cst_62 : f32 to vector<16x64xf32>
    %233 = arith.addf %231, %232 : vector<16x64xf32>
    %234 = arith.mulf %233, %226 : vector<16x64xf32>
    %cst_63 = arith.constant -0.284496725 : f32
    %235 = vector.broadcast %cst_63 : f32 to vector<16x64xf32>
    %236 = arith.addf %234, %235 : vector<16x64xf32>
    %237 = arith.mulf %236, %226 : vector<16x64xf32>
    %cst_64 = arith.constant 0.254829586 : f32
    %238 = vector.broadcast %cst_64 : f32 to vector<16x64xf32>
    %239 = arith.addf %237, %238 : vector<16x64xf32>
    %240 = arith.mulf %239, %226 : vector<16x64xf32>
    %241 = arith.mulf %220, %220 : vector<16x64xf32>
    %cst_65 = arith.constant 0.000000e+00 : f32
    %242 = vector.broadcast %cst_65 : f32 to vector<16x64xf32>
    %243 = arith.subf %242, %241 : vector<16x64xf32>
    %244 = math.exp %243 : vector<16x64xf32>
    %245 = arith.mulf %240, %244 : vector<16x64xf32>
    %cst_66 = arith.constant 1.000000e+00 : f32
    %246 = vector.broadcast %cst_66 : f32 to vector<16x64xf32>
    %247 = arith.subf %246, %245 : vector<16x64xf32>
    %cst_67 = arith.constant 0.000000e+00 : f32
    %248 = vector.broadcast %cst_67 : f32 to vector<16x64xf32>
    %249 = arith.cmpf olt, %219, %248 : vector<16x64xf32>
    %cst_68 = arith.constant 0.000000e+00 : f32
    %250 = vector.broadcast %cst_68 : f32 to vector<16x64xf32>
    %251 = arith.subf %250, %247 : vector<16x64xf32>
    %252 = arith.select %249, %251, %247 : vector<16x64xi1>, vector<16x64xf32>
    %cst_69 = arith.constant 1.000000e+00 : f32
    %253 = vector.broadcast %cst_69 : f32 to vector<16x64xf32>
    %254 = arith.addf %253, %252 : vector<16x64xf32>
    %255 = arith.mulf %217, %254 : vector<16x64xf32>
    %c96 = arith.constant 96 : index
    %c0_70 = arith.constant 0 : index
    %256 = vector.load %arg1[%c96, %c0_70] : memref<168x128xf32, #tpu.memory_space<vmem>>, vector<64x32xf32>
    %cst_71 = arith.constant dense<0.000000e+00> : vector<16x32xf32>
    %257 = tpu.matmul %255, %256, %cst_71 {dimension_numbers = #tpu.dot_dimension_numbers<[1], [0], [0], [1], [0, 0, 1, 1], [], []>} : vector<16x64xf32>, vector<64x32xf32>, vector<16x32xf32> -> vector<16x32xf32>
    %258 = vector.broadcast %8 : vector<1x32xf32> to vector<16x32xf32>
    %259 = arith.addf %257, %258 : vector<16x32xf32>
    %260 = arith.addf %259, %187 : vector<16x32xf32>
    %c0_72 = arith.constant 0 : index
    %c0_73 = arith.constant 0 : index
    %261 = vector.load %arg2[%c0_72, %c0_73] : memref<16x32xf32, #tpu.memory_space<vmem>>, vector<16x32xf32>
    tpu.vector_store %arg2[%c0_72, %c0_73], %260 {strides = array<i32>} : memref<16x32xf32, #tpu.memory_space<vmem>>, vector<16x32xf32>,
    return
  }
}

</mosaic_0001>

<bundles_post_ra>
// kernel: transformer_encoder_layer.1
= control target key start
LH: loop header
LB: loop body
LE: loop exit
PB: predicated region body
PF: predicated region fallthrough
CT: control target
= control target key end

     0   :  { %9 = vsyncpa [#allocation3], 0  ;;  %s2197_s0 = inlined_call_operand.hbm [shape: f32[16,32], index: 0, kind: input, shape index: {}]   ;;  %s2198_s1 = inlined_call_operand.hbm [shape: f32[168,128], index: 1, kind: input, shape index: {}]   ;;  %s2199_s2 = inlined_call_operand.hbm [shape: f32[16,32], index: 2, kind: output, shape index: {0}]   ;;  %s2200_s3 = inlined_call_operand.vmem [shape: f32[4,16,16], index: 3, kind: output, shape index: {1}]  }
   0x1   :  { %10 = vsyncpa [#allocation6], 0 }
   0x2   :  { %11 = vsyncpa [#allocation4], 0  ;;  %s1894_s12 = smov [#allocation2]   ;;  %s1822_s16 = scalar_lea.hbm %s2197_s0, 256 }
   0x3   :  { %s17_s13 = sshll.u32 %s1894_s12, 4  ;;  %p1823_p0 = scmp.ne.s32.totalorder %s2197_s0, %s1822_s16  ;;  %s18_s13 = int_to_ptr.vmem [resolvable:$true] %s17_s13 }
   0x4   :  { %p1826_p1 = scmp.lt.u32.totalorder %s1822_s16, %s2197_s0 }
   0x6   :  { %p1828_p2 = pnand %p1826_p1, %p1823_p0 }
   0x8   :  { %1831 = shalt.err (!%p1828_p2)
}
   0x9   :  { %s1832_s21 = scalar_lea.vmem %s18_s13, 256  ;;  %p1837_p4 = scmp.lt.s32.totalorder %s18_s13, %s18_s13 }
   0xa   :  { %p1833_p3 = scmp.ne.s32.totalorder %s18_s13, %s1832_s21  ;;  %p1838_p5 = scmp.lt.s32.totalorder %s1832_s21, %s1832_s21 }
   0xc   :  { %p1839_p6 = por %p1838_p5, %p1837_p4 }
   0xe   :  { %p1840_p7 = pnand %p1839_p6, %p1833_p3 }
  0x10   :  { %1843 = shalt.err (!%p1840_p7)
}
  0x11   :  { %s1895_s22 = smov 128   ;;  %s1896_s23 = smov 8  }
  0x12   :  { %23 = dma.hbm_to_vmem [thread:$0]  %s2197_s0, 256, %s18_s13, [#allocation3], %s1895_s22, %s1895_s22, %s1896_s23  }
  0x13   :  { %s1897_s26 = smov [#allocation5]   ;;  %s1844_s30 = scalar_lea.hbm %s2198_s1, 2688 }
  0x14   :  { %s29_s27 = sshll.u32 %s1897_s26, 4  ;;  %p1845_p8 = scmp.ne.s32.totalorder %s2198_s1, %s1844_s30  ;;  %s30_s27 = int_to_ptr.vmem [resolvable:$true] %s29_s27 }
  0x15   :  { %p1848_p9 = scmp.lt.u32.totalorder %s1844_s30, %s2198_s1 }
  0x17   :  { %p1850_p10 = pnand %p1848_p9, %p1845_p8 }
  0x19   :  { %1853 = shalt.err (!%p1850_p10)
}
  0x1a   :  { %s1854_s8 = scalar_lea.vmem %s30_s27, 2688  ;;  %p1859_p12 = scmp.lt.s32.totalorder %s30_s27, %s30_s27 }
  0x1b   :  { %p1855_p11 = scmp.ne.s32.totalorder %s30_s27, %s1854_s8  ;;  %p1860_p13 = scmp.lt.s32.totalorder %s1854_s8, %s1854_s8 }
  0x1d   :  { %p1861_p0 = por %p1860_p13, %p1859_p12 }
  0x1f   :  { %p1862_p1 = pnand %p1861_p0, %p1855_p11 }
  0x21   :  { %1865 = shalt.err (!%p1862_p1)
}
  0x22   :  { %35 = dma.hbm_to_vmem [thread:$0]  %s2198_s1, 2688, %s30_s27, [#allocation6], %s1895_s22, %s1895_s22, %s1896_s23  }
  0x23   :  { %1888 = dma.done.wait [#allocation3], 256  }
  0x24   :  { %1889 = vsyncadd [#allocation3], 4294967040 }
  0x25   :  { %1890 = dma.done.wait [#allocation6], 2688  }
  0x26   :  { %1891 = vsyncadd [#allocation6], 4294964608  ;;  %vm45_vm0 = vcmask 261120   ;;  %v1953_v0 = vld [vmem:[#allocation2] sm:$0xff]  ;;  %v1955_v1 = vld [vmem:[#allocation2 + $0x8] sm:$0xff]  ;;  %v73_v22 = vlaneseq  ;;  %v1898_v42 = vmov 0.0  }
  0x27   :  { %v46_v2 = vsel %vm45_vm0, %v1953_v0, 0.0  ;;  %v49_v3 = vsel %vm45_vm0, %v1955_v1, 0.0  ;;  %v85_v14 = vld [vmem:[#allocation5] sm:$0xff]  ;;  %v86_v15 = vld [vmem:[#allocation5 + $0x8] sm:$0xff]  ;;  %v87_v16 = vld [vmem:[#allocation5 + $0x10] sm:$0xff]  ;;  %s1899_s1 = smov 96  }
  0x28   :  { %47 = vadd.xlane.f32.xlu0 %v46_v2  ;;  %v1654_v17 = vpack.c.bf16 %v86_v15, %v85_v14  ;;  %v88_v18 = vld [vmem:[#allocation5 + $0x18] sm:$0xff]  ;;  %v1965_v26 = vshrl.u32 %v73_v22, 7  ;;  %v1968_v29 = vld [vmem:[#allocation5 + $0xa0] sm:$0xff]  ;;  %v175_v41 = vand.u32 127, %v73_v22  ;;  %vm2003_vm11 = vmpackc.low %vm45_vm0, %vm45_vm0  ;;  %vm316_vm12 = vcmask 130048   ;;  %s1901_s10 = smov 64  }
  0x29   :  { %v1658_v19 = vpack.c.bf16 %v88_v18, %v87_v16  ;;  %vm1342_vm15 = vcmask 523264  }
  0x2a   :  { %1655 = vmatprep.subr.bf16.mxu0 %v1654_v17  ;;  %v75_v28 = vsub.s32 0, %v1965_v26  ;;  %v81_v30 = vsub.s32 1, %v1965_v26  ;;  %vm186_vm1 = vcmp.ge.s32.totalorder %v175_v41, 16  ;;  %vm187_vm2 = vcmp.lt.s32.totalorder %v175_v41, 24 }
  0x2b   :  { %1657 = vmatpush3.bf16.msra.mxu0 %v1654_v17  ;;  %vm188_vm3 = vmand %vm186_vm1, %vm187_vm2  ;;  %vm191_vm4 = vcmp.ge.s32.totalorder %v175_v41, 24  ;;  %vm192_vm5 = vcmp.lt.s32.totalorder %v175_v41, 32  ;;  %v91_v45 = vsub.s32 4, %v1965_v26  ;;  %vm181_vm7 = vcmp.ge.s32.totalorder %v175_v41, 8 }
  0x2c   :  { %50 = vadd.xlane.f32.xlu0 %v49_v3  ;;  %1659 = vmatprep.subr.bf16.mxu0 %v1658_v19  ;;  %v76_v31 = vrot.slane %v1968_v29, %v75_v28  ;;  %v82_v34 = vrot.slane %v1968_v29, %v81_v30  ;;  %v1975_v43 = vsel %vm188_vm3, 1.0, %v1898_v42  ;;  %vm193_vm6 = vmand %vm191_vm4, %vm192_vm5  ;;  %vm182_vm8 = vcmp.lt.s32.totalorder %v175_v41, 16 }
  0x2d   :  { %v1977_v44 = vsel %vm193_vm6, 1.0, %v1898_v42  ;;  %v92_v46 = vrot.slane %v1968_v29, %v91_v45  ;;  %vm177_vm9 = vcmp.lt.s32.totalorder %v175_v41, 8  ;;  %vm1981_vm10 = vmand %vm181_vm7, %vm182_vm8 }
  0x2e   :  { %v1988_v51 = vsel %vm177_vm9, 1.0, %v1898_v42  ;;  %v1453_v52 = vsel %vm1981_vm10, 1.0, %v1898_v42 }
  0x2f   :  { %1661 = vmatpush3.bf16.msra.mxu0 %v1658_v19 }
  0xb5   :  { %v48_v4 = vpop.xlane.xlu0 %47 }
  0xb6   :  { %v53_v5 = vmul.f32 0.03125, %v48_v4  ;;  %v1900_v4 = vmov -1e+30  }
  0xb8   :  { %v55_v6 = vsub.f32 %v1953_v0, %v53_v5  ;;  %v2027_v5 = vsel %vm177_vm9, 0.0, %v1900_v4 }
  0xb9   :  { %v51_v7 = vpop.xlane.xlu0 %50 }
  0xba   :  { %v54_v8 = vmul.f32 0.03125, %v51_v7  ;;  %v57_v9 = vmul.f32 %v55_v6, %v55_v6 }
  0xbc   :  { %v56_v10 = vsub.f32 %v1955_v1, %v54_v8  ;;  %v59_v11 = vsel %vm45_vm0, %v57_v9, 0.0 }
  0xbd   :  { %60 = vadd.xlane.f32.xlu1 %v59_v11 }
  0xbe   :  { %v58_v12 = vmul.f32 %v56_v10, %v56_v10 }
  0xc0   :  { %v62_v13 = vsel %vm45_vm0, %v58_v12, 0.0 }
  0xc1   :  { %63 = vadd.xlane.f32.xlu1 %v62_v13 }
 0x14a   :  { %v61_v20 = vpop.xlane.xlu1 %60 }
 0x14b   :  { %v65_v21 = vmul.f32 0.03125, %v61_v20 }
 0x14d   :  { %v67_v23 = vadd.f32 1e-06, %v65_v21 }
 0x14e   :  { %v64_v24 = vpop.xlane.xlu1 %63 }
 0x14f   :  { %1774 = vrsqrt.f32 %v67_v23  ;;  %v66_v25 = vmul.f32 0.03125, %v64_v24 }
 0x151   :  { %v68_v27 = vadd.f32 1e-06, %v66_v25 }
 0x153   :  { %1776 = vrsqrt.f32 %v68_v27 }
 0x159   :  { %v1775_v32 = vpop.eup %1774 }
 0x15a   :  { %v71_v33 = vmul.f32 %v1775_v32, %v55_v6 }
 0x15c   :  { %v77_v35 = vmul.f32 %v76_v31, %v71_v33 }
 0x15d   :  { %v1777_v36 = vpop.eup %1776 }
 0x15e   :  { %v72_v37 = vmul.f32 %v1777_v36, %v56_v10  ;;  %v83_v38 = vadd.f32 %v82_v34, %v77_v35  ;;  %v2031_v10 = vsel %vm1981_vm10, 0.0, %v1900_v4 }
 0x160   :  { %v78_v39 = vmul.f32 %v76_v31, %v72_v37  ;;  %1554 = vmatprep.mubr.msk.f32.mxu0 %vm45_vm0, %v83_v38 }
 0x162   :  { %v84_v40 = vadd.f32 %v82_v34, %v78_v39 }
 0x164   :  { %1555 = vmatmul.mubr.msk.f32.vlgmr.msra.gmra.mrb[0].mxu0 %vm45_vm0, %v84_v40 }
 0x237   :  { %v1556_v48 = vpop.f32.mrb[0].mxu0 }
 0x238   :  { %v1985_v49 = vadd.f32 %v1556_v48, %v92_v46  ;;  %v165_v50 = vpop.f32.mrb[1].mxu0 }
 0x239   :  { %v1992_v53 = vadd.f32 %v165_v50, %v92_v46 }
 0x23a   :  { %v220_v62 = vmul.f32 %v1988_v51, %v1985_v49  ;;  %v346_v63 = vmul.f32 %v1453_v52, %v1985_v49 }
 0x23b   :  { %v1749_v54 = vpack.i.bf16 %v1985_v49, %v1992_v53  ;;  %v219_v55 = vmul.f32 %v1988_v51, %v1992_v53  ;;  %v345_v56 = vmul.f32 %v1453_v52, %v1992_v53 }
 0x23d   :  { %1750 = vrot.lane.b32.xlu0 %v1749_v54, %s1899_s1  ;;  %1561 = vmatprep.mubr.msk.f32.mxu1 %vm45_vm0, %v219_v55  ;;  %v638_v54 = vmul.f32 %v1975_v43, %v1992_v53 }
 0x23e   :  { %1568 = vmatprep.mubr.msk.f32.mxu0 %vm45_vm0, %v345_v56 }
 0x2af   :  { %v1751_v57 = vpop.permute.xlu0 %1750 }
 0x2b0   :  { %v1753_v58 = vunpack.i.h.bf16 %v1751_v57  ;;  %v1752_v59 = vunpack.i.l.bf16 %v1751_v57  ;;  %v639_v57 = vmul.f32 %v1975_v43, %v1985_v49 }
 0x2b2   :  { %v2007_v61 = vpack.c.bf16 %v1753_v58, %v1752_v59 }
 0x2b4   :  { %1664 = vmatprep.subr.msk.bf16.mxu1 %vm2003_vm11, %v2007_v61  ;;  %1670 = vmatprep.subr.msk.bf16.mxu0 %vm2003_vm11, %v2007_v61 }
 0x2b5   :  { %1667 = vmatpush3.bf16.xpose.msk.msra.mxu1 %vm2003_vm11, %v2007_v61  ;;  %1673 = vmatpush3.bf16.xpose.msk.msra.mxu0 %vm2003_vm11, %v2007_v61 }
 0x2bc   :  { %1562 = vmatmul.mubr.msk.f32.vlgmr.msra.gmra.mrb[0].mxu1 %vm45_vm0, %v220_v62  ;;  %1569 = vmatmul.mubr.msk.f32.vlgmr.msra.gmra.mrb[2].mxu0 %vm45_vm0, %v346_v63 }
 0x38f   :  { %v1563_v2 = vpop.f32.mrb[0].mxu1  ;;  %v1570_v3 = vpop.f32.mrb[2].mxu0 }
 0x390   :  { %v303_v6 = vpop.f32.mrb[1].mxu1  ;;  %v419_v7 = vpop.f32.mrb[3].mxu0  ;;  %v429_v8 = vmul.f32 0.35355338, %v1570_v3  ;;  %v313_v25 = vmul.f32 0.35355338, %v1563_v2 }
 0x391   :  { %v428_v9 = vmul.f32 0.35355338, %v419_v7  ;;  %v312_v22 = vmul.f32 0.35355338, %v303_v6 }
 0x392   :  { %v431_v13 = vadd.f32 %v429_v8, %v2031_v10  ;;  %v2043_v31 = vadd.f32 %v313_v25, %v2031_v10 }
 0x393   :  { %v430_v11 = vadd.f32 %v428_v9, %v2027_v5  ;;  %v314_v28 = vadd.f32 %v312_v22, %v2027_v5 }
 0x394   :  { %v435_v14 = vsel %vm316_vm12, %v431_v13, -inf  ;;  %v320_v32 = vsel %vm316_vm12, %v2043_v31, -inf }
 0x395   :  { %v432_v12 = vsel %vm316_vm12, %v430_v11, -inf  ;;  %v317_v30 = vsel %vm316_vm12, %v314_v28, -inf }
 0x396   :  { %433 = vmax.xlane.f32.xlu1 %v432_v12 }
 0x39a   :  { %436 = vmax.xlane.f32.xlu1 %v435_v14 }
 0x3ab   :  { %455 = vrot.lane.b32.xlu1 %v1453_v52, %s1901_s10 }
 0x423   :  { %v434_v15 = vpop.xlane.xlu1 %433 }
 0x424   :  { %v438_v16 = vsub.f32 %v430_v11, %v434_v15 }
 0x426   :  { %v440_v17 = vmul.f32 1.442695, %v438_v16 }
 0x427   :  { %v437_v18 = vpop.xlane.xlu1 %436 }
 0x428   :  { %1778 = vpow2.f32 %v440_v17  ;;  %v439_v19 = vsub.f32 %v431_v13, %v437_v18 }
 0x42a   :  { %v442_v20 = vmul.f32 1.442695, %v439_v19 }
 0x42b   :  { %v456_v33 = vpop.permute.xlu1 %455 }
 0x42c   :  { %1780 = vpow2.f32 %v442_v20  ;;  %v458_v34 = vmul.f32 %v456_v33, %v1992_v53  ;;  %v459_v35 = vmul.f32 %v456_v33, %v1985_v49 }
 0x42e   :  { %v1754_v36 = vpack.i.bf16 %v459_v35, %v458_v34 }
 0x432   :  { %v1779_v21 = vpop.eup %1778 }
 0x433   :  { %v444_v23 = vsel %vm316_vm12, %v1779_v21, 0.0 }
 0x434   :  { %445 = vadd.xlane.f32.xlu0 %v444_v23 }
 0x436   :  { %v1781_v24 = vpop.eup %1780 }
 0x437   :  { %v447_v27 = vsel %vm316_vm12, %v1781_v24, 0.0 }
 0x438   :  { %448 = vadd.xlane.f32.xlu1 %v447_v27 }
 0x43c   :  { %318 = vmax.xlane.f32.xlu1 %v317_v30 }
 0x440   :  { %321 = vmax.xlane.f32.xlu1 %v320_v32 }
 0x44a   :  { %1755 = vrot.lane.b32.xlu0 %v1754_v36, %s1901_s10 }
 0x44e   :  { %340 = vrot.lane.b32.xlu0 %v1988_v51, %s1901_s10 }
 0x4c1   :  { %v446_v37 = vpop.xlane.xlu0 %445 }
 0x4c2   :  { %1782 = vrcp.f32 %v446_v37 }
 0x4c5   :  { %v1756_v38 = vpop.permute.xlu0 %1755  ;;  %v449_v39 = vpop.xlane.xlu1 %448 }
 0x4c6   :  { %v1758_v40 = vunpack.i.h.bf16 %v1756_v38  ;;  %v1757_v41 = vunpack.i.l.bf16 %v1756_v38  ;;  %1784 = vrcp.f32 %v449_v39 }
 0x4c8   :  { %v1674_v42 = vpack.c.bf16 %v1758_v40, %v1757_v41 }
 0x4c9   :  { %v319_v45 = vpop.xlane.xlu1 %318  ;;  %v341_v58 = vpop.permute.xlu0 %340 }
 0x4ca   :  { %v323_v46 = vsub.f32 %v314_v28, %v319_v45  ;;  %1675 = vmatprep.subr.bf16.mxu0 %v1674_v42  ;;  %v343_v34 = vmul.f32 %v341_v58, %v1992_v53  ;;  %v344_v35 = vmul.f32 %v341_v58, %v1985_v49  ;;  %v844_v58 = vmul.f32 %v1977_v44, %v1992_v53 }
 0x4cb   :  { %1677 = vmatpush3.bf16.msra.mxu0 %v1674_v42 }
 0x4cc   :  { %v1783_v47 = vpop.eup %1782  ;;  %v325_v48 = vmul.f32 1.442695, %v323_v46  ;;  %1684 = vmatprep.subr.msk.bf16.mxu0 %vm2003_vm11, %v2007_v61  ;;  %v1759_v36 = vpack.i.bf16 %v344_v35, %v343_v34  ;;  %v1061_v34 = vld [vmem:[#allocation5 + $0x38] sm:$0xff] }
 0x4cd   :  { %v451_v50 = vmul.f32 %v1783_v47, %v1779_v21  ;;  %v322_v14 = vpop.xlane.xlu1 %321 }
 0x4ce   :  { %1786 = vpow2.f32 %v325_v48  ;;  %v324_v15 = vsub.f32 %v2043_v31, %v322_v14 }
 0x4cf   :  { %1575 = vmatprep.mubr.msk.f32.mxu0 %vm316_vm12, %v451_v50  ;;  %1052 = vst.msk [vmem:[%s2200_s3 + $0x10] sm:$0xff] %vm316_vm12, %v451_v50 }
 0x4d0   :  { %v1785_v51 = vpop.eup %1784  ;;  %v327_v16 = vmul.f32 1.442695, %v324_v15 }
 0x4d1   :  { %v453_v52 = vmul.f32 %v1785_v51, %v1781_v24 }
 0x4d3   :  { %1053 = vst.msk [vmem:[%s2200_s3 + $0x18] sm:$0xff] %vm316_vm12, %v453_v52  ;;  %1576 = vmatmul.mubr.msk.f32.vlgmr.msra.gmra.mrb[4].mxu0 %vm316_vm12, %v453_v52 }
 0x4d4   :  { %1687 = vmatpush3.bf16.xpose.msk.msra.mxu0 %vm2003_vm11, %v2007_v61  ;;  %1589 = vmatprep.mubr.msk.f32.mxu0 %vm45_vm0, %v638_v54 }
 0x4d8   :  { %v1787_v55 = vpop.eup %1786 }
 0x4d9   :  { %v329_v56 = vsel %vm316_vm12, %v1787_v55, 0.0 }
 0x4da   :  { %330 = vadd.xlane.f32.xlu0 %v329_v56 }
 0x4db   :  { %1590 = vmatmul.mubr.msk.f32.vlgmr.msra.gmra.mrb[6].mxu0 %vm45_vm0, %v639_v57 }
 0x567   :  { %v331_v59 = vpop.xlane.xlu0 %330 }
 0x568   :  { %1788 = vrcp.f32 %v331_v59  ;;  %v845_v59 = vmul.f32 %v1977_v44, %v1985_v49 }
 0x569   :  { %1790 = vpow2.f32 %v327_v16 }
 0x572   :  { %v1789_v62 = vpop.eup %1788 }
 0x573   :  { %v336_v63 = vmul.f32 %v1789_v62, %v1787_v55  ;;  %v1791_v17 = vpop.eup %1790 }
 0x574   :  { %v332_v18 = vsel %vm316_vm12, %v1791_v17, 0.0 }
 0x575   :  { %1582 = vmatprep.mubr.msk.f32.mxu1 %vm316_vm12, %v336_v63  ;;  %1050 = vst.msk [vmem:[%s2200_s3] sm:$0xff] %vm316_vm12, %v336_v63 }
 0x5a6   :  { %v2080_v2 = vpop.f32.mrb[4].mxu0 }
 0x5a7   :  { %v2082_v3 = vpop.f32.mrb[5].mxu0 }
 0x5ae   :  { %v1591_v4 = vpop.f32.mrb[6].mxu0 }
 0x5af   :  { %v712_v6 = vpop.f32.mrb[7].mxu0  ;;  %v722_v7 = vmul.f32 0.35355338, %v1591_v4 }
 0x5b0   :  { %v721_v8 = vmul.f32 0.35355338, %v712_v6 }
 0x5b1   :  { %v724_v12 = vadd.f32 %v722_v7, %v2031_v10 }
 0x5b2   :  { %v723_v9 = vadd.f32 %v721_v8, %v2027_v5 }
 0x5b3   :  { %v728_v13 = vsel %vm316_vm12, %v724_v12, -inf }
 0x5b4   :  { %v725_v11 = vsel %vm316_vm12, %v723_v9, -inf }
 0x5b5   :  { %726 = vmax.xlane.f32.xlu1 %v725_v11 }
 0x5b9   :  { %729 = vmax.xlane.f32.xlu1 %v728_v13 }
 0x5ca   :  { %748 = vrot.lane.b32.xlu1 %v1975_v43, %s1901_s10 }
 0x5ee   :  { %333 = vadd.xlane.f32.xlu1 %v332_v18 }
 0x642   :  { %v727_v19 = vpop.xlane.xlu1 %726 }
 0x643   :  { %v731_v20 = vsub.f32 %v723_v9, %v727_v19 }
 0x645   :  { %v733_v23 = vmul.f32 1.442695, %v731_v20 }
 0x646   :  { %v730_v21 = vpop.xlane.xlu1 %729 }
 0x647   :  { %v732_v22 = vsub.f32 %v724_v12, %v730_v21  ;;  %v1058_v21 = vld [vmem:[#allocation5 + $0x20] sm:$0xff] }
 0x649   :  { %v735_v24 = vmul.f32 1.442695, %v732_v22  ;;  %v1059_v22 = vld [vmem:[#allocation5 + $0x28] sm:$0xff] }
 0x64a   :  { %v749_v25 = vpop.permute.xlu1 %748 }
 0x64b   :  { %1792 = vpow2.f32 %v735_v24  ;;  %v751_v27 = vmul.f32 %v749_v25, %v1992_v53  ;;  %v752_v43 = vmul.f32 %v749_v25, %v1985_v49 }
 0x64c   :  { %1794 = vpow2.f32 %v733_v23  ;;  %v1702_v23 = vpack.c.bf16 %v1059_v22, %v1058_v21 }
 0x64d   :  { %v1764_v28 = vpack.i.bf16 %v752_v43, %v751_v27 }
 0x64e   :  { %1703 = vmatprep.subr.bf16.mxu0 %v1702_v23 }
 0x64f   :  { %1765 = vrot.lane.b32.xlu1 %v1764_v28, %s1901_s10  ;;  %1705 = vmatpush3.bf16.msra.mxu0 %v1702_v23  ;;  %v1330_v23 = vld [vmem:[#allocation5 + $0x60] sm:$0xff] }
 0x655   :  { %v1793_v30 = vpop.eup %1792 }
 0x656   :  { %v740_v31 = vsel %vm316_vm12, %v1793_v30, 0.0  ;;  %v1795_v32 = vpop.eup %1794 }
 0x657   :  { %741 = vadd.xlane.f32.xlu0 %v740_v31  ;;  %v737_v33 = vsel %vm316_vm12, %v1795_v32, 0.0 }
 0x65b   :  { %738 = vadd.xlane.f32.xlu0 %v737_v33  ;;  %v1060_v33 = vld [vmem:[#allocation5 + $0x30] sm:$0xff] }
 0x65c   :  { %v1706_v35 = vpack.c.bf16 %v1061_v34, %v1060_v33  ;;  %v1193_v34 = vsub.s32 6, %v1965_v26 }
 0x65e   :  { %1707 = vmatprep.subr.bf16.mxu0 %v1706_v35 }
 0x65f   :  { %1709 = vmatpush3.bf16.msra.mxu0 %v1706_v35  ;;  %v1194_v35 = vrot.slane %v1968_v29, %v1193_v34 }
 0x671   :  { %1760 = vrot.lane.b32.xlu0 %v1759_v36, %s1901_s10 }
 0x67b   :  { %v334_v37 = vpop.xlane.xlu1 %333 }
 0x67c   :  { %1796 = vrcp.f32 %v334_v37 }
 0x686   :  { %v1797_v38 = vpop.eup %1796 }
 0x687   :  { %v338_v39 = vmul.f32 %v1797_v38, %v1791_v17 }
 0x689   :  { %1051 = vst.msk [vmem:[%s2200_s3 + $0x8] sm:$0xff] %vm316_vm12, %v338_v39 }
 0x6c1   :  { %v1766_v42 = vpop.permute.xlu1 %1765 }
 0x6c2   :  { %v1768_v46 = vunpack.i.h.bf16 %v1766_v42  ;;  %v1767_v47 = vunpack.i.l.bf16 %v1766_v42 }
 0x6c4   :  { %v1688_v55 = vpack.c.bf16 %v1768_v46, %v1767_v47 }
 0x6e4   :  { %v742_v40 = vpop.xlane.xlu0 %741 }
 0x6e5   :  { %1798 = vrcp.f32 %v742_v40  ;;  %v1064_v40 = vsub.s32 5, %v1965_v26 }
 0x6e8   :  { %v739_v41 = vpop.xlane.xlu0 %738 }
 0x6e9   :  { %1800 = vrcp.f32 %v739_v41  ;;  %v1065_v41 = vrot.slane %v1968_v29, %v1064_v40 }
 0x6ec   :  { %v1761_v45 = vpop.permute.xlu0 %1760 }
 0x6ed   :  { %v1763_v48 = vunpack.i.h.bf16 %v1761_v45  ;;  %v1762_v50 = vunpack.i.l.bf16 %v1761_v45 }
 0x6ef   :  { %v1799_v51 = vpop.eup %1798  ;;  %v1678_v52 = vpack.c.bf16 %v1763_v48, %v1762_v50 }
 0x6f0   :  { %v746_v54 = vmul.f32 %v1799_v51, %v1793_v30 }
 0x6f1   :  { %1679 = vmatprep.subr.bf16.mxu1 %v1678_v52 }
 0x6f2   :  { %1055 = vst.msk [vmem:[%s2200_s3 + $0x28] sm:$0xff] %vm316_vm12, %v746_v54  ;;  %1681 = vmatpush3.bf16.msra.mxu1 %v1678_v52 }
 0x6f3   :  { %v1801_v56 = vpop.eup %1800  ;;  %1689 = vmatprep.subr.bf16.mxu1 %v1688_v55 }
 0x6f4   :  { %v744_v57 = vmul.f32 %v1801_v56, %v1795_v32 }
 0x6f5   :  { %1583 = vmatmul.mubr.msk.f32.vlgmr.msra.gmra.mrb[2].mxu1 %vm316_vm12, %v338_v39 }
 0x6f6   :  { %1691 = vmatpush3.bf16.msra.mxu1 %v1688_v55  ;;  %1596 = vmatprep.mubr.msk.f32.mxu1 %vm316_vm12, %v744_v57  ;;  %1054 = vst.msk [vmem:[%s2200_s3 + $0x20] sm:$0xff] %vm316_vm12, %v744_v57 }
 0x6f7   :  { %1694 = vmatprep.subr.msk.bf16.mxu1 %vm2003_vm11, %v2007_v61 }
 0x6fd   :  { %1597 = vmatmul.mubr.msk.f32.vlgmr.msra.gmra.mrb[2].mxu1 %vm316_vm12, %v746_v54 }
 0x6fe   :  { %1603 = vmatprep.mubr.msk.f32.mxu1 %vm45_vm0, %v844_v58 }
 0x6ff   :  { %1697 = vmatpush3.bf16.xpose.msk.msra.mxu1 %vm2003_vm11, %v2007_v61 }
 0x706   :  { %1604 = vmatmul.mubr.msk.f32.vlgmr.msra.gmra.mrb[4].mxu1 %vm45_vm0, %v845_v59 }
 0x7d9   :  { %v1605_v62 = vpop.f32.mrb[4].mxu1 }
 0x7da   :  { %v928_v63 = vmul.f32 0.35355338, %v1605_v62  ;;  %v918_v4 = vpop.f32.mrb[5].mxu1  ;;  %v1187_v62 = vld [vmem:[#allocation5 + $0x40] sm:$0xff] }
 0x7db   :  { %v927_v6 = vmul.f32 0.35355338, %v918_v4 }
 0x7dc   :  { %v930_v7 = vadd.f32 %v928_v63, %v2031_v10  ;;  %v1188_v63 = vld [vmem:[#allocation5 + $0x48] sm:$0xff] }
 0x7dd   :  { %v929_v8 = vadd.f32 %v927_v6, %v2027_v5  ;;  %v1710_v4 = vpack.c.bf16 %v1188_v63, %v1187_v62  ;;  %v1189_v6 = vld [vmem:[#allocation5 + $0x50] sm:$0xff] }
 0x7de   :  { %v934_v9 = vsel %vm316_vm12, %v930_v7, -inf }
 0x7df   :  { %935 = vmax.xlane.f32.xlu1 %v934_v9  ;;  %v931_v11 = vsel %vm316_vm12, %v929_v8, -inf  ;;  %1711 = vmatprep.subr.bf16.mxu0 %v1710_v4 }
 0x7e0   :  { %932 = vmax.xlane.f32.xlu0 %v931_v11 }
 0x7f6   :  { %954 = vrot.lane.b32.xlu0 %v1977_v44, %s1901_s10 }
 0x86c   :  { %v936_v60 = vpop.xlane.xlu1 %935 }
 0x86d   :  { %v938_v61 = vsub.f32 %v930_v7, %v936_v60  ;;  %v933_v12 = vpop.xlane.xlu0 %932  ;;  %v1190_v7 = vld [vmem:[#allocation5 + $0x58] sm:$0xff] }
 0x86e   :  { %v937_v13 = vsub.f32 %v929_v8, %v933_v12  ;;  %v1714_v8 = vpack.c.bf16 %v1190_v7, %v1189_v6 }
 0x86f   :  { %v941_v14 = vmul.f32 1.442695, %v938_v61 }
 0x870   :  { %v939_v15 = vmul.f32 1.442695, %v937_v13 }
 0x871   :  { %1802 = vpow2.f32 %v941_v14  ;;  %v955_v18 = vpop.permute.xlu0 %954  ;;  %v1177_v14 = vsub.s32 2, %v1965_v26 }
 0x872   :  { %1804 = vpow2.f32 %v939_v15  ;;  %v957_v19 = vmul.f32 %v955_v18, %v1992_v53  ;;  %v958_v44 = vmul.f32 %v955_v18, %v1985_v49  ;;  %v1183_v15 = vsub.s32 3, %v1965_v26 }
 0x874   :  { %v1769_v20 = vpack.i.bf16 %v958_v44, %v957_v19 }
 0x87b   :  { %v1803_v10 = vpop.eup %1802 }
 0x87c   :  { %v946_v5 = vsel %vm316_vm12, %v1803_v10, 0.0  ;;  %v1805_v16 = vpop.eup %1804 }
 0x87d   :  { %947 = vadd.xlane.f32.xlu1 %v946_v5  ;;  %v943_v17 = vsel %vm316_vm12, %v1805_v16, 0.0 }
 0x881   :  { %944 = vadd.xlane.f32.xlu1 %v943_v17  ;;  %v1184_v17 = vrot.slane %v1968_v29, %v1183_v15 }
 0x892   :  { %1770 = vrot.lane.b32.xlu1 %v1769_v20, %s1901_s10 }
 0x90a   :  { %v948_v24 = vpop.xlane.xlu1 %947 }
 0x90b   :  { %1806 = vrcp.f32 %v948_v24  ;;  %v1331_v24 = vld [vmem:[#allocation5 + $0x68] sm:$0xff] }
 0x90e   :  { %v945_v25 = vpop.xlane.xlu1 %944 }
 0x90f   :  { %1808 = vrcp.f32 %v945_v25  ;;  %v1718_v25 = vpack.c.bf16 %v1331_v24, %v1330_v23 }
 0x912   :  { %v1771_v27 = vpop.permute.xlu1 %1770 }
 0x913   :  { %v1773_v43 = vunpack.i.h.bf16 %v1771_v27  ;;  %v1772_v28 = vunpack.i.l.bf16 %v1771_v27  ;;  %v1332_v27 = vld [vmem:[#allocation5 + $0x70] sm:$0xff] }
 0x915   :  { %v1807_v30 = vpop.eup %1806  ;;  %v1698_v31 = vpack.c.bf16 %v1773_v43, %v1772_v28  ;;  %v1333_v43 = vld [vmem:[#allocation5 + $0x78] sm:$0xff] }
 0x916   :  { %v952_v53 = vmul.f32 %v1807_v30, %v1803_v10  ;;  %v1178_v10 = vrot.slane %v1968_v29, %v1177_v14  ;;  %v1722_v28 = vpack.c.bf16 %v1333_v43, %v1332_v27  ;;  %v1334_v30 = vld [vmem:[#allocation5 + $0x80] sm:$0xff] }
 0x917   :  { %1699 = vmatprep.subr.bf16.mxu1 %v1698_v31 }
 0x918   :  { %1057 = vst.msk [vmem:[%s2200_s3 + $0x38] sm:$0xff] %vm316_vm12, %v952_v53  ;;  %1701 = vmatpush3.bf16.msra.mxu1 %v1698_v31  ;;  %v1335_v31 = vld [vmem:[#allocation5 + $0x88] sm:$0xff] }
 0x919   :  { %v1809_v49 = vpop.eup %1808  ;;  %1719 = vmatprep.subr.bf16.mxu1 %v1718_v25 }
 0x91a   :  { %v950_v32 = vmul.f32 %v1809_v49, %v1805_v16  ;;  %v1336_v49 = vld [vmem:[#allocation5 + $0x90] sm:$0xff] }
 0x91c   :  { %1610 = vmatprep.mubr.msk.f32.mxu1 %vm316_vm12, %v950_v32  ;;  %1056 = vst.msk [vmem:[%s2200_s3 + $0x30] sm:$0xff] %vm316_vm12, %v950_v32  ;;  %v1337_v32 = vld [vmem:[#allocation5 + $0x98] sm:$0xff]  ;;  %s1902_s3 = smov [#allocation7]  }
 0x91d   :  { %1611 = vmatmul.mubr.msk.f32.vlgmr.msra.gmra.mrb[2].mxu1 %vm316_vm12, %v952_v53  ;;  %v1726_v53 = vpack.c.bf16 %v1335_v31, %v1334_v30  ;;  %v1730_v33 = vpack.c.bf16 %v1337_v32, %v1336_v49  ;;  %s1433_s29 = sshll.u32 %s1902_s3, 4  ;;  %s1434_s29 = int_to_ptr.vmem [resolvable:$true] %s1433_s29 }
 0x91e   :  { %1721 = vmatpush3.bf16.msra.mxu1 %v1718_v25  ;;  %s1866_s30 = scalar_lea.vmem %s1434_s29, 256  ;;  %p1871_p3 = scmp.lt.s32.totalorder %s1434_s29, %s1434_s29 }
 0x91f   :  { %1723 = vmatprep.subr.bf16.mxu1 %v1722_v28  ;;  %p1867_p2 = scmp.ne.s32.totalorder %s1434_s29, %s1866_s30  ;;  %p1872_p4 = scmp.lt.s32.totalorder %s1866_s30, %s1866_s30 }
 0x921   :  { %p1873_p5 = por %p1872_p4, %p1871_p3 }
 0x922   :  { %1725 = vmatpush3.bf16.msra.mxu1 %v1722_v28 }
 0x923   :  { %1727 = vmatprep.subr.bf16.mxu1 %v1726_v53  ;;  %p1874_p6 = pnand %p1873_p5, %p1867_p2 }
 0x926   :  { %1729 = vmatpush3.bf16.msra.mxu1 %v1726_v53  ;;  %v1340_v53 = vsub.s32 7, %v1965_v26 }
 0x927   :  { %1731 = vmatprep.subr.bf16.mxu1 %v1730_v33 }
 0x928   :  { %v1341_v49 = vrot.slane %v1968_v29, %v1340_v53 }
 0x92a   :  { %1733 = vmatpush3.bf16.msra.mxu1 %v1730_v33 }
 0x9f0   :  { %v1612_v36 = vpop.f32.mrb[2].mxu1 }
 0x9f1   :  { %v1734_v37 = vadd.f32 %v1612_v36, %v2080_v2  ;;  %v1039_v38 = vpop.f32.mrb[3].mxu1 }
 0x9f2   :  { %v1735_v39 = vadd.f32 %v1039_v38, %v2082_v3 }
 0x9f4   :  { %1621 = vmatprep.mubr.msk.f32.mxu0 %vm45_vm0, %v1735_v39 }
 0x9f5   :  { %1622 = vmatmul.mubr.msk.f32.vlgmr.msra.gmra.mrb[8].mxu0 %vm45_vm0, %v1734_v37 }
 0x9f6   :  { %1713 = vmatpush3.bf16.msra.mxu0 %v1710_v4 }
 0x9f7   :  { %1715 = vmatprep.subr.bf16.mxu0 %v1714_v8 }
 0x9fa   :  { %1717 = vmatpush3.bf16.msra.mxu0 %v1714_v8 }
 0xac8   :  { %v1623_v42 = vpop.f32.mrb[8].mxu0 }
 0xac9   :  { %v1144_v45 = vadd.f32 %v1623_v42, %v1065_v41  ;;  %v1138_v46 = vpop.f32.mrb[9].mxu0 }
 0xaca   :  { %v1139_v47 = vadd.f32 %v1138_v46, %v1065_v41 }
 0xacb   :  { %v2155_v48 = vadd.f32 %v1144_v45, %v1955_v1 }
 0xacc   :  { %v2158_v2 = vadd.f32 %v1139_v47, %v1953_v0 }
 0xacd   :  { %v1152_v3 = vsel %vm45_vm0, %v2155_v48, 0.0 }
 0xace   :  { %1153 = vadd.xlane.f32.xlu1 %v1152_v3  ;;  %v1149_v50 = vsel %vm45_vm0, %v2158_v2, 0.0 }
 0xacf   :  { %1150 = vadd.xlane.f32.xlu0 %v1149_v50 }
 0xb5b   :  { %v1154_v51 = vpop.xlane.xlu1 %1153 }
 0xb5c   :  { %v1156_v52 = vmul.f32 0.03125, %v1154_v51  ;;  %v1151_v54 = vpop.xlane.xlu0 %1150 }
 0xb5d   :  { %v1155_v55 = vmul.f32 0.03125, %v1151_v54 }
 0xb5e   :  { %v1158_v56 = vsub.f32 %v2155_v48, %v1156_v52 }
 0xb5f   :  { %v1157_v1 = vsub.f32 %v2158_v2, %v1155_v55 }
 0xb60   :  { %v1160_v58 = vmul.f32 %v1158_v56, %v1158_v56 }
 0xb61   :  { %v1159_v57 = vmul.f32 %v1157_v1, %v1157_v1 }
 0xb62   :  { %v1164_v59 = vsel %vm45_vm0, %v1160_v58, 0.0 }
 0xb63   :  { %v1161_v0 = vsel %vm45_vm0, %v1159_v57, 0.0 }
 0xb64   :  { %1162 = vadd.xlane.f32.xlu0 %v1161_v0 }
 0xb68   :  { %1165 = vadd.xlane.f32.xlu0 %v1164_v59 }
 0xbf1   :  { %v1163_v9 = vpop.xlane.xlu0 %1162 }
 0xbf2   :  { %v1167_v11 = vmul.f32 0.03125, %v1163_v9 }
 0xbf4   :  { %v1169_v60 = vadd.f32 1e-06, %v1167_v11 }
 0xbf5   :  { %v1166_v61 = vpop.xlane.xlu0 %1165 }
 0xbf6   :  { %1810 = vrsqrt.f32 %v1169_v60  ;;  %v1168_v12 = vmul.f32 0.03125, %v1166_v61 }
 0xbf8   :  { %v1170_v13 = vadd.f32 1e-06, %v1168_v12 }
 0xbfa   :  { %1812 = vrsqrt.f32 %v1170_v13 }
 0xc00   :  { %v1811_v5 = vpop.eup %1810 }
 0xc01   :  { %v1173_v16 = vmul.f32 %v1811_v5, %v1157_v1 }
 0xc03   :  { %v1179_v18 = vmul.f32 %v1178_v10, %v1173_v16 }
 0xc04   :  { %v1813_v19 = vpop.eup %1812 }
 0xc05   :  { %v1174_v44 = vmul.f32 %v1813_v19, %v1158_v56  ;;  %v1185_v20 = vadd.f32 %v1184_v17, %v1179_v18 }
 0xc07   :  { %v1180_v21 = vmul.f32 %v1178_v10, %v1174_v44  ;;  %1632 = vmatprep.mubr.msk.f32.mxu0 %vm45_vm0, %v1185_v20 }
 0xc09   :  { %v1186_v22 = vadd.f32 %v1184_v17, %v1180_v21 }
 0xc0b   :  { %1633 = vmatmul.mubr.msk.f32.vlgmr.msra.gmra.mrb[10].mxu0 %vm45_vm0, %v1186_v22 }
 0xcde   :  { %v1634_v36 = vpop.f32.mrb[10].mxu0 }
 0xcdf   :  { %v1273_v37 = vadd.f32 %v1634_v36, %v1194_v35  ;;  %v1267_v38 = vpop.f32.mrb[11].mxu0 }
 0xce0   :  { %v1268_v39 = vadd.f32 %v1267_v38, %v1194_v35 }
 0xce1   :  { %v1279_v40 = vmul.f32 0.70710677, %v1273_v37  ;;  %v1277_v28 = vmul.f32 0.5, %v1273_v37 }
 0xce2   :  { %v1278_v41 = vmul.f32 0.70710677, %v1268_v39  ;;  %v1276_v27 = vmul.f32 0.5, %v1268_v39 }
 0xce3   :  { %v1281_v42 = vand.u32 2147483647, %v1279_v40  ;;  %vm1321_vm13 = vcmp.lt.f32.partialorder %v1279_v40, 0.0 }
 0xce4   :  { %v1280_v45 = vand.u32 2147483647, %v1278_v41  ;;  %vm1320_vm14 = vcmp.lt.f32.partialorder %v1278_v41, 0.0 }
 0xce5   :  { %v1283_v46 = vmul.f32 0.3275911, %v1281_v42  ;;  %v1309_v51 = vmul.f32 %v1281_v42, %v1281_v42 }
 0xce6   :  { %v1282_v47 = vmul.f32 0.3275911, %v1280_v45  ;;  %v1308_v52 = vmul.f32 %v1280_v45, %v1280_v45 }
 0xce7   :  { %v1285_v3 = vadd.f32 1.0, %v1283_v46  ;;  %v1311_v55 = vsub.f32 0.0, %v1309_v51 }
 0xce8   :  { %v1284_v50 = vadd.f32 1.0, %v1282_v47  ;;  %v1310_v57 = vsub.f32 0.0, %v1308_v52 }
 0xce9   :  { %1814 = vrcp.f32 %v1285_v3  ;;  %v1314_v59 = vmul.f32 1.442695, %v1311_v55 }
 0xcea   :  { %1816 = vrcp.f32 %v1284_v50  ;;  %v1312_v4 = vmul.f32 1.442695, %v1310_v57 }
 0xceb   :  { %1818 = vpow2.f32 %v1314_v59 }
 0xcec   :  { %1820 = vpow2.f32 %v1312_v4 }
 0xcf3   :  { %v1815_v54 = vpop.eup %1814 }
 0xcf4   :  { %v1817_v56 = vpop.eup %1816  ;;  %v1291_v1 = vmul.f32 1.0614054, %v1815_v54 }
 0xcf5   :  { %v1290_v0 = vmul.f32 1.0614054, %v1817_v56  ;;  %v1819_v5 = vpop.eup %1818 }
 0xcf6   :  { %v1293_v58 = vadd.f32 -1.4531521, %v1291_v1  ;;  %v1821_v17 = vpop.eup %1820 }
 0xcf7   :  { %v1292_v62 = vadd.f32 -1.4531521, %v1290_v0 }
 0xcf8   :  { %v1295_v63 = vmul.f32 %v1815_v54, %v1293_v58 }
 0xcf9   :  { %v1294_v6 = vmul.f32 %v1817_v56, %v1292_v62 }
 0xcfa   :  { %v1297_v7 = vadd.f32 1.4214138, %v1295_v63 }
 0xcfb   :  { %v1296_v8 = vadd.f32 1.4214138, %v1294_v6 }
 0xcfc   :  { %v1299_v9 = vmul.f32 %v1815_v54, %v1297_v7 }
 0xcfd   :  { %v1298_v11 = vmul.f32 %v1817_v56, %v1296_v8 }
 0xcfe   :  { %v1301_v60 = vadd.f32 -0.28449672, %v1299_v9 }
 0xcff   :  { %v1300_v61 = vadd.f32 -0.28449672, %v1298_v11 }
 0xd00   :  { %v1303_v12 = vmul.f32 %v1815_v54, %v1301_v60 }
 0xd01   :  { %v1302_v13 = vmul.f32 %v1817_v56, %v1300_v61 }
 0xd02   :  { %v1305_v14 = vadd.f32 0.2548296, %v1303_v12 }
 0xd03   :  { %v1304_v15 = vadd.f32 0.2548296, %v1302_v13 }
 0xd04   :  { %v1307_v10 = vmul.f32 %v1815_v54, %v1305_v14 }
 0xd05   :  { %v1306_v16 = vmul.f32 %v1817_v56, %v1304_v15 }
 0xd06   :  { %v1317_v18 = vmul.f32 %v1819_v5, %v1307_v10 }
 0xd07   :  { %v1316_v19 = vmul.f32 %v1821_v17, %v1306_v16 }
 0xd08   :  { %v1319_v44 = vsub.f32 1.0, %v1317_v18 }
 0xd09   :  { %v1318_v20 = vsub.f32 1.0, %v1316_v19 }
 0xd0a   :  { %v1323_v21 = vsub.f32 0.0, %v1319_v44 }
 0xd0b   :  { %v1322_v22 = vsub.f32 0.0, %v1318_v20 }
 0xd0c   :  { %v1325_v23 = vsel %vm1321_vm13, %v1323_v21, %v1319_v44 }
 0xd0d   :  { %v1327_v24 = vadd.f32 1.0, %v1325_v23  ;;  %v1324_v25 = vsel %vm1320_vm14, %v1322_v22, %v1318_v20 }
 0xd0e   :  { %v1326_v43 = vadd.f32 1.0, %v1324_v25 }
 0xd0f   :  { %v1329_v31 = vmul.f32 %v1327_v24, %v1277_v28 }
 0xd10   :  { %v1328_v30 = vmul.f32 %v1326_v43, %v1276_v27 }
 0xd12   :  { %1651 = vmatprep.mubr.msk.f32.mxu1 %vm1342_vm15, %v1328_v30 }
 0xd13   :  { %1652 = vmatmul.mubr.msk.f32.vlgmr.msra.gmra.mrb[6].mxu1 %vm1342_vm15, %v1329_v31 }
 0xde6   :  { %v1653_v32 = vpop.f32.mrb[6].mxu1 }
 0xde7   :  { %v1421_v33 = vadd.f32 %v1653_v32, %v1341_v49  ;;  %v1415_v34 = vpop.f32.mrb[7].mxu1 }
 0xde8   :  { %v1416_v35 = vadd.f32 %v1415_v34, %v1341_v49 }
 0xde9   :  { %v1425_v36 = vadd.f32 %v1421_v33, %v2155_v48 }
 0xdea   :  { %v1424_v38 = vadd.f32 %v1416_v35, %v2158_v2 }
 0xdeb   :  { %1427 = vst.msk [vmem:[#allocation7 + $0x8] sm:$0xff] %vm45_vm0, %v1425_v36 }
 0xdec   :  { %1426 = vst.msk [vmem:[#allocation7] sm:$0xff] %vm45_vm0, %v1424_v38 }
 0xded   :  { %1877 = shalt.err (!%p1874_p6)
}
 0xdee   :  { %s1878_s6 = scalar_lea.hbm %s2199_s2, 256 }
 0xdef   :  { %p1879_p7 = scmp.ne.s32.totalorder %s2199_s2, %s1878_s6  ;;  %p1882_p8 = scmp.lt.u32.totalorder %s1878_s6, %s2199_s2 }
 0xdf1   :  { %p1884_p9 = pnand %p1882_p8, %p1879_p7 }
 0xdf3   :  { %1887 = shalt.err (!%p1884_p9)
}
 0xdf4   :  { %1439 = dma.vmem_to_hbm [thread:$0]  %s1434_s29, 256, %s2199_s2, [#allocation4], %s1895_s22, %s1895_s22, %s1896_s23  }
 0xdf5   :  { %1892 = dma.done.wait [#allocation4], 256  }
 0xdf6   :  { %1893 = vsyncadd [#allocation4], 4294967040 }
 0xdf7   :  { %1447 = vsyncpa [#allocation3], 1 }
 0xdf8   :  { %1448 = vsyncpa [#allocation6], 1 }
 0xdf9   :  { %1449 = vsyncpa [#allocation4], 1 }

</bundles_post_ra>
